<compile_context>
chip_gen: v6e
topology: v6e:2x2x1
jax: 0.10.0
libtpu: 0.0.40
codegen_flags: <defaults>
</compile_context>

<pallas_src>
import functools

import jax
import jax.numpy as jnp
import numpy as np
from jax.experimental import pallas as pl
from jax.experimental.pallas import tpu as pltpu


def _inverted_residual_kernel(*refs, W, HW, batch_tile, use_res, expand,
                              expand_on_mxu, matmul_dtype):
    """Fused InvertedResidual forward on one (batch_tile, C, H*W) block."""
    if expand:
        (x_ref, w1_ref, b1_ref, wdw_ref, b2_ref,
         mask_ref, w3_ref, b3_ref, o_ref) = refs
    else:
        (x_ref, wdw_ref, b2_ref, mask_ref, w3_ref, b3_ref, o_ref) = refs
        w1_ref = b1_ref = None

    taps = wdw_ref[...]      # (hidden, 9)  f32, BN2 scale already folded in
    masks = mask_ref[...]    # (9, H*W)     f32 {0,1} per-tap edge masks

    for b in range(batch_tile):                      # static, small
        x = x_ref[b]                                 # (cin, H*W) f32

        # --- 1x1 expand conv + BN bias + ReLU (BN scale folded into w1) -----
        if expand:
            if expand_on_mxu:
                t = jnp.dot(w1_ref[...], x.astype(matmul_dtype),
                            preferred_element_type=jnp.float32)
            else:
                # tiny contraction dim: a few VPU FMAs beat an MXU pass
                w1 = w1_ref[...]
                t = w1[:, 0:1] * x[0:1, :]
                for c in range(1, x.shape[0]):
                    t = t + w1[:, c:c + 1] * x[c:c + 1, :]
            t = jnp.maximum(t + b1_ref[...], 0.0)
        else:
            t = x

        # --- 3x3 depthwise conv (stride 1, pad 1) via XLU lane rolls --------
        # Tap (dy, dx) on the flattened (h, w) lane axis is a cyclic roll by
        # -(dy*W + dx) plus a precomputed edge mask (masks also kill any
        # wrap-around across rows / the image boundary).
        acc = jnp.zeros_like(t)
        for dy in (-1, 0, 1):
            for dx in (-1, 0, 1):
                k = (dy + 1) * 3 + (dx + 1)
                shift = (-(dy * W + dx)) % HW        # non-negative, static
                shifted = pltpu.roll(t, shift, axis=1) if shift else t
                if dy != 0 or dx != 0:
                    shifted = shifted * masks[k:k + 1, :]
                acc = acc + shifted * taps[:, k:k + 1]
        t2 = jnp.maximum(acc + b2_ref[...], 0.0)

        # --- 1x1 project conv + BN bias (BN scale folded into w3) -----------
        y = jnp.dot(w3_ref[...], t2.astype(matmul_dtype),
                    preferred_element_type=jnp.float32)
        y = y + b3_ref[...]

        if use_res:
            y = y + x                                # residual stays in f32

        o_ref[b] = y.astype(o_ref.dtype)


def _vmem_cap_bytes():
    # Generation-aware ceiling: ~3/4 of physical VMEM (128 MiB v5e/v6e -> 96,
    # 64 MiB v7x -> 48).  Conservative fallback if the query is unavailable.
    try:
        get_info = getattr(pltpu, "get_tpu_info", None)
        if get_info is not None:
            cap = int(get_info().vmem_capacity_bytes)
            if cap > 0:
                return max((cap * 3) // 4, 32 << 20)
    except Exception:
        pass
    return 48 << 20


def inverted_residual_pallas(x_nchw, params, *, stride, expand_ratio, inp, oup,
                             batch_tile=None, matmul_dtype=jnp.float32):
    # TODO(synk): stride == 2 depthwise downsampling path not implemented.
    assert stride == 1, "only stride=1 supported in this kernel"
    N, cin, H, W = x_nchw.shape
    assert cin == inp
    HW = H * W
    hidden = round(inp * expand_ratio)
    expand = expand_ratio != 1
    if not expand:
        assert hidden == cin, "expand_ratio == 1 requires hidden == cin"
    use_res = (stride == 1) and (inp == oup)

    # Lane-density guard: every image contributes HW lanes to the block.
    # TODO(synk): for real MobileNet sizes (14x14, 7x7) pad H*W up to a
    # multiple of 128 and fold the pad lanes into the edge masks.
    assert HW % 128 == 0, "H*W must be a multiple of 128 for lane-dense blocks"

    if batch_tile is None:
        batch_tile = 1                               # >= 2 grid steps for N >= 2
        if N >= 4 and HW < 512:
            bt = min(N // 2, max(1, 512 // HW))      # keep >= ~512 lanes / step
            while N % bt:
                bt -= 1
            batch_tile = max(bt, 1)
    assert N % batch_tile == 0, "batch_tile must divide N"
    grid = (N // batch_tile,)

    f32 = jnp.float32
    # Fold BN scales into the weights (exact; depthwise is per-channel).
    w1_f = (params["w1t"] * params["s1"]).astype(f32)    # (hidden, cin)
    wdw_f = (params["wdwt"] * params["s2"]).astype(f32)  # (hidden, 9)
    w3_f = (params["w3t"] * params["s3"]).astype(f32)    # (oup, hidden)
    b1 = params["b1"].astype(f32)
    b2 = params["b2"].astype(f32)
    b3 = params["b3"].astype(f32)

    expand_on_mxu = expand and (cin >= 16)
    w1_pass = w1_f.astype(matmul_dtype) if expand_on_mxu else w1_f
    w3_pass = w3_f.astype(matmul_dtype)

    # Precompute the 3x3 depthwise edge masks on the host (loop-invariant).
    pos = np.arange(HW)
    hpos, wpos = pos // W, pos % W
    masks_np = np.zeros((9, HW), np.float32)
    for dy in (-1, 0, 1):
        for dx in (-1, 0, 1):
            k = (dy + 1) * 3 + (dx + 1)
            masks_np[k] = (((hpos + dy) >= 0) & ((hpos + dy) < H) &
                           ((wpos + dx) >= 0) & ((wpos + dx) < W))
    masks = jnp.asarray(masks_np)

    x3 = x_nchw.reshape(N, cin, HW)                  # free reshape, no transpose

    kernel = functools.partial(
        _inverted_residual_kernel,
        W=W, HW=HW, batch_tile=batch_tile, use_res=use_res, expand=expand,
        expand_on_mxu=expand_on_mxu, matmul_dtype=matmul_dtype)

    def full(r, c):
        return pl.BlockSpec((r, c), lambda i: (0, 0))

    in_specs = [pl.BlockSpec((batch_tile, cin, HW), lambda i: (i, 0, 0))]
    operands = [x3]
    if expand:
        in_specs += [full(hidden, cin), full(hidden, 1)]
        operands += [w1_pass, b1]
    in_specs += [full(hidden, 9), full(hidden, 1), full(9, HW),
                 full(oup, hidden), full(oup, 1)]
    operands += [wdw_f, b2, masks, w3_pass, b3]

    # VMEM budget: I/O blocks double-buffered, in-kernel intermediates single.
    isz = 4
    io_bytes = 2 * batch_tile * (cin + oup) * HW * isz
    inter_bytes = 6 * hidden * HW * isz
    weight_bytes = (hidden * (cin + 9 + 2) + oup * (hidden + 1) + 9 * HW) * isz
    vmem_limit = int(min(max(io_bytes + inter_bytes + 2 * weight_bytes
                             + (8 << 20), 32 << 20), _vmem_cap_bytes()))

    M = N * HW
    flops = 2 * M * hidden * (cin + 9 + oup) + 4 * M * hidden + 2 * M * oup
    bytes_accessed = isz * (M * (cin + oup) + hidden * (cin + 9 + 2)
                            + oup * (hidden + 1) + 9 * HW)

    out3 = pl.pallas_call(
        kernel,
        out_shape=jax.ShapeDtypeStruct((N, oup, HW), jnp.float32),
        grid=grid,
        in_specs=in_specs,
        out_specs=pl.BlockSpec((batch_tile, oup, HW), lambda i: (i, 0, 0)),
        compiler_params=pltpu.CompilerParams(
            dimension_semantics=("parallel",),
            vmem_limit_bytes=vmem_limit),
        cost_estimate=pl.CostEstimate(flops=flops, transcendentals=0,
                                      bytes_accessed=bytes_accessed),
    )(*operands)

    return out3.reshape(N, oup, H, W)                # free reshape


# ----------------------- pure NumPy reference (float64) ---------------------
def inverted_residual_ref(x_nchw, params, *, stride, expand_ratio, inp, oup):
    assert stride == 1
    x = np.asarray(x_nchw, np.float64)
    N, C, H, W = x.shape
    hidden = round(inp * expand_ratio)
    use_res = (stride == 1) and (inp == oup)
    p = {k: np.asarray(v, np.float64) for k, v in params.items()}

    def bn(t, s, b):
        c = t.shape[1]
        return t * s.reshape(1, c, 1, 1) + b.reshape(1, c, 1, 1)

    t = x
    if expand_ratio != 1:
        t = np.einsum("oc,nchw->nohw", p["w1t"], t)
        t = np.maximum(bn(t, p["s1"], p["b1"]), 0.0)
    tp = np.pad(t, ((0, 0), (0, 0), (1, 1), (1, 1)))
    out = np.zeros_like(t)
    for ky in range(3):
        for kx in range(3):
            out += (p["wdwt"][:, ky * 3 + kx].reshape(1, hidden, 1, 1)
                    * tp[:, :, ky:ky + H, kx:kx + W])
    t = np.maximum(bn(out, p["s2"], p["b2"]), 0.0)
    t = np.einsum("oc,nchw->nohw", p["w3t"], t)
    t = bn(t, p["s3"], p["b3"])
    if use_res:
        t = t + x
    return t


def make_params(key, inp, oup, expand_ratio, eps=1e-5):
    hidden = round(inp * expand_ratio)
    ks = jax.random.split(key, 15)

    def bn(kg, kb, km, kv, c):
        gamma = 1.0 + 0.1 * jax.random.normal(kg, (c,), jnp.float32)
        beta = 0.1 * jax.random.normal(kb, (c,), jnp.float32)
        mean = 0.1 * jax.random.normal(km, (c,), jnp.float32)
        var = 0.5 + 0.5 * jnp.abs(jax.random.normal(kv, (c,), jnp.float32))
        scale = gamma / jnp.sqrt(var + eps)
        bias = beta - mean * scale
        return scale.reshape(c, 1), bias.reshape(c, 1)   # channel-first (C, 1)

    w1t = 0.1 * jax.random.normal(ks[0], (hidden, inp), jnp.float32)
    wdwt = 0.1 * jax.random.normal(ks[1], (hidden, 9), jnp.float32)
    w3t = 0.1 * jax.random.normal(ks[2], (oup, hidden), jnp.float32)
    s1, b1 = bn(ks[3], ks[4], ks[5], ks[6], hidden)
    s2, b2 = bn(ks[7], ks[8], ks[9], ks[10], hidden)
    s3, b3 = bn(ks[11], ks[12], ks[13], ks[14], oup)
    return dict(w1t=w1t, s1=s1, b1=b1, wdwt=wdwt, s2=s2, b2=b2,
                w3t=w3t, s3=s3, b3=b3)


if __name__ == "__main__":
    # InvertedResidual(inp=4, oup=4, stride=1, expand_ratio=6) -> residual used
    N, Cin, H, W = 2, 4, 16, 16
    oup, stride, expand_ratio = 4, 1, 6

    key = jax.random.PRNGKey(0)
    kx, kp = jax.random.split(key)
    x_nchw = jax.random.normal(kx, (N, Cin, H, W), jnp.float32)  # PyTorch layout
    params = make_params(kp, Cin, oup, expand_ratio)

    ref = inverted_residual_ref(x_nchw, params, stride=stride,
                                expand_ratio=expand_ratio, inp=Cin, oup=oup)

    # f32 matmul operands: matches the reference within f32 rounding.
    out = inverted_residual_pallas(x_nchw, params, stride=stride,
                                   expand_ratio=expand_ratio, inp=Cin, oup=oup)
    out = jax.block_until_ready(out)
    assert out.shape == (N, oup, H, W)
    np.testing.assert_allclose(np.asarray(out), ref, rtol=1e-3, atol=1e-3)

    # bf16 MXU-operand variant (perf-review item for v6e/v7x); accumulation,
    # BN, ReLU, depthwise and the residual add stay in f32.
    out_bf16 = inverted_residual_pallas(x_nchw, params, stride=stride,
                                        expand_ratio=expand_ratio, inp=Cin,
                                        oup=oup, matmul_dtype=jnp.bfloat16)
    out_bf16 = jax.block_until_ready(out_bf16)
    np.testing.assert_allclose(np.asarray(out_bf16), ref, rtol=3e-2, atol=3e-2)

    print("KERNEL_OK")
</pallas_src>

<mosaic_0001>
module attributes {stable_mosaic.version = 11 : i64} {
  func.func @_inverted_residual_kernel(%arg0: i32, %arg1: memref<1x4x256xf32, #tpu.memory_space<vmem>>, %arg2: memref<24x4xf32, #tpu.memory_space<vmem>>, %arg3: memref<24x1xf32, #tpu.memory_space<vmem>>, %arg4: memref<24x9xf32, #tpu.memory_space<vmem>>, %arg5: memref<24x1xf32, #tpu.memory_space<vmem>>, %arg6: memref<9x256xf32, #tpu.memory_space<vmem>>, %arg7: memref<4x24xf32, #tpu.memory_space<vmem>>, %arg8: memref<4x1xf32, #tpu.memory_space<vmem>>, %arg9: memref<1x4x256xf32, #tpu.memory_space<vmem>>) attributes {dimension_semantics = [#tpu.dimension_semantics<parallel>], iteration_bounds = array<i64: 2>, scalar_prefetch = 0 : i64, scratch_operands = 0 : i64, tpu.core_type = #tpu.core_type<tc>, window_params = [{transform_indices = @transform_0, window_bounds = array<i64: 1, 4, 256>}, {pipeline_mode = #tpu.pipeline_mode<synchronous>, transform_indices = @transform_1, window_bounds = array<i64: 24, 4>}, {pipeline_mode = #tpu.pipeline_mode<synchronous>, transform_indices = @transform_2, window_bounds = array<i64: 24, 1>}, {pipeline_mode = #tpu.pipeline_mode<synchronous>, transform_indices = @transform_3, window_bounds = array<i64: 24, 9>}, {pipeline_mode = #tpu.pipeline_mode<synchronous>, transform_indices = @transform_4, window_bounds = array<i64: 24, 1>}, {pipeline_mode = #tpu.pipeline_mode<synchronous>, transform_indices = @transform_5, window_bounds = array<i64: 9, 256>}, {pipeline_mode = #tpu.pipeline_mode<synchronous>, transform_indices = @transform_6, window_bounds = array<i64: 4, 24>}, {pipeline_mode = #tpu.pipeline_mode<synchronous>, transform_indices = @transform_7, window_bounds = array<i64: 4, 1>}, {transform_indices = @transform_8, window_bounds = array<i64: 1, 4, 256>}]} {
    %c0 = arith.constant 0 : index
    %c0_0 = arith.constant 0 : index
    %0 = vector.load %arg4[%c0, %c0_0] : memref<24x9xf32, #tpu.memory_space<vmem>>, vector<24x9xf32>
    %c0_1 = arith.constant 0 : index
    %c0_2 = arith.constant 0 : index
    %1 = vector.load %arg6[%c0_1, %c0_2] : memref<9x256xf32, #tpu.memory_space<vmem>>, vector<9x256xf32>
    %c0_3 = arith.constant 0 : index
    %c0_4 = arith.constant 0 : index
    %c0_5 = arith.constant 0 : index
    %2 = vector.load %arg1[%c0_3, %c0_4, %c0_5] : memref<1x4x256xf32, #tpu.memory_space<vmem>>, vector<1x4x256xf32>
    %3 = vector.shape_cast %2 : vector<1x4x256xf32> to vector<4x256xf32>
    %c0_6 = arith.constant 0 : index
    %c0_7 = arith.constant 0 : index
    %4 = vector.load %arg2[%c0_6, %c0_7] : memref<24x4xf32, #tpu.memory_space<vmem>>, vector<24x4xf32>
    %5 = vector.extract_strided_slice %4 {offsets = [0, 0], sizes = [24, 1], strides = [1, 1]} : vector<24x4xf32> to vector<24x1xf32>
    %6 = vector.extract_strided_slice %3 {offsets = [0, 0], sizes = [1, 256], strides = [1, 1]} : vector<4x256xf32> to vector<1x256xf32>
    %7 = vector.broadcast %5 : vector<24x1xf32> to vector<24x256xf32>
    %8 = vector.broadcast %6 : vector<1x256xf32> to vector<24x256xf32>
    %9 = arith.mulf %7, %8 : vector<24x256xf32>
    %10 = vector.extract_strided_slice %4 {offsets = [0, 1], sizes = [24, 1], strides = [1, 1]} : vector<24x4xf32> to vector<24x1xf32>
    %11 = vector.extract_strided_slice %3 {offsets = [1, 0], sizes = [1, 256], strides = [1, 1]} : vector<4x256xf32> to vector<1x256xf32>
    %12 = vector.broadcast %10 : vector<24x1xf32> to vector<24x256xf32>
    %13 = vector.broadcast %11 : vector<1x256xf32> to vector<24x256xf32>
    %14 = arith.mulf %12, %13 : vector<24x256xf32>
    %15 = arith.addf %9, %14 : vector<24x256xf32>
    %16 = vector.extract_strided_slice %4 {offsets = [0, 2], sizes = [24, 1], strides = [1, 1]} : vector<24x4xf32> to vector<24x1xf32>
    %17 = vector.extract_strided_slice %3 {offsets = [2, 0], sizes = [1, 256], strides = [1, 1]} : vector<4x256xf32> to vector<1x256xf32>
    %18 = vector.broadcast %16 : vector<24x1xf32> to vector<24x256xf32>
    %19 = vector.broadcast %17 : vector<1x256xf32> to vector<24x256xf32>
    %20 = arith.mulf %18, %19 : vector<24x256xf32>
    %21 = arith.addf %15, %20 : vector<24x256xf32>
    %22 = vector.extract_strided_slice %4 {offsets = [0, 3], sizes = [24, 1], strides = [1, 1]} : vector<24x4xf32> to vector<24x1xf32>
    %23 = vector.extract_strided_slice %3 {offsets = [3, 0], sizes = [1, 256], strides = [1, 1]} : vector<4x256xf32> to vector<1x256xf32>
    %24 = vector.broadcast %22 : vector<24x1xf32> to vector<24x256xf32>
    %25 = vector.broadcast %23 : vector<1x256xf32> to vector<24x256xf32>
    %26 = arith.mulf %24, %25 : vector<24x256xf32>
    %27 = arith.addf %21, %26 : vector<24x256xf32>
    %c0_8 = arith.constant 0 : index
    %c0_9 = arith.constant 0 : index
    %28 = vector.load %arg3[%c0_8, %c0_9] : memref<24x1xf32, #tpu.memory_space<vmem>>, vector<24x1xf32>
    %29 = vector.broadcast %28 : vector<24x1xf32> to vector<24x256xf32>
    %30 = arith.addf %27, %29 : vector<24x256xf32>
    %cst = arith.constant 0.000000e+00 : f32
    %31 = vector.broadcast %cst : f32 to vector<24x256xf32>
    %32 = arith.maximumf %30, %31 : vector<24x256xf32>
    %cst_10 = arith.constant 0.000000e+00 : f32
    %33 = vector.broadcast %cst_10 : f32 to vector<24x256xf32>
    %c17_i32 = arith.constant 17 : i32
    %34 = tpu.dynamic_rotate %32 by %c17_i32 dim 1 : vector<24x256xf32>, i32 -> vector<24x256xf32>
    %35 = vector.extract_strided_slice %1 {offsets = [0, 0], sizes = [1, 256], strides = [1, 1]} : vector<9x256xf32> to vector<1x256xf32>
    %36 = vector.broadcast %35 : vector<1x256xf32> to vector<24x256xf32>
    %37 = arith.mulf %34, %36 : vector<24x256xf32>
    %38 = vector.extract_strided_slice %0 {offsets = [0, 0], sizes = [24, 1], strides = [1, 1]} : vector<24x9xf32> to vector<24x1xf32>
    %39 = vector.broadcast %38 : vector<24x1xf32> to vector<24x256xf32>
    %40 = arith.mulf %37, %39 : vector<24x256xf32>
    %41 = arith.addf %33, %40 : vector<24x256xf32>
    %c16_i32 = arith.constant 16 : i32
    %42 = tpu.dynamic_rotate %32 by %c16_i32 dim 1 : vector<24x256xf32>, i32 -> vector<24x256xf32>
    %43 = vector.extract_strided_slice %1 {offsets = [1, 0], sizes = [1, 256], strides = [1, 1]} : vector<9x256xf32> to vector<1x256xf32>
    %44 = vector.broadcast %43 : vector<1x256xf32> to vector<24x256xf32>
    %45 = arith.mulf %42, %44 : vector<24x256xf32>
    %46 = vector.extract_strided_slice %0 {offsets = [0, 1], sizes = [24, 1], strides = [1, 1]} : vector<24x9xf32> to vector<24x1xf32>
    %47 = vector.broadcast %46 : vector<24x1xf32> to vector<24x256xf32>
    %48 = arith.mulf %45, %47 : vector<24x256xf32>
    %49 = arith.addf %41, %48 : vector<24x256xf32>
    %c15_i32 = arith.constant 15 : i32
    %50 = tpu.dynamic_rotate %32 by %c15_i32 dim 1 : vector<24x256xf32>, i32 -> vector<24x256xf32>
    %51 = vector.extract_strided_slice %1 {offsets = [2, 0], sizes = [1, 256], strides = [1, 1]} : vector<9x256xf32> to vector<1x256xf32>
    %52 = vector.broadcast %51 : vector<1x256xf32> to vector<24x256xf32>
    %53 = arith.mulf %50, %52 : vector<24x256xf32>
    %54 = vector.extract_strided_slice %0 {offsets = [0, 2], sizes = [24, 1], strides = [1, 1]} : vector<24x9xf32> to vector<24x1xf32>
    %55 = vector.broadcast %54 : vector<24x1xf32> to vector<24x256xf32>
    %56 = arith.mulf %53, %55 : vector<24x256xf32>
    %57 = arith.addf %49, %56 : vector<24x256xf32>
    %c1_i32 = arith.constant 1 : i32
    %58 = tpu.dynamic_rotate %32 by %c1_i32 dim 1 : vector<24x256xf32>, i32 -> vector<24x256xf32>
    %59 = vector.extract_strided_slice %1 {offsets = [3, 0], sizes = [1, 256], strides = [1, 1]} : vector<9x256xf32> to vector<1x256xf32>
    %60 = vector.broadcast %59 : vector<1x256xf32> to vector<24x256xf32>
    %61 = arith.mulf %58, %60 : vector<24x256xf32>
    %62 = vector.extract_strided_slice %0 {offsets = [0, 3], sizes = [24, 1], strides = [1, 1]} : vector<24x9xf32> to vector<24x1xf32>
    %63 = vector.broadcast %62 : vector<24x1xf32> to vector<24x256xf32>
    %64 = arith.mulf %61, %63 : vector<24x256xf32>
    %65 = arith.addf %57, %64 : vector<24x256xf32>
    %66 = vector.extract_strided_slice %0 {offsets = [0, 4], sizes = [24, 1], strides = [1, 1]} : vector<24x9xf32> to vector<24x1xf32>
    %67 = vector.broadcast %66 : vector<24x1xf32> to vector<24x256xf32>
    %68 = arith.mulf %32, %67 : vector<24x256xf32>
    %69 = arith.addf %65, %68 : vector<24x256xf32>
    %c255_i32 = arith.constant 255 : i32
    %70 = tpu.dynamic_rotate %32 by %c255_i32 dim 1 : vector<24x256xf32>, i32 -> vector<24x256xf32>
    %71 = vector.extract_strided_slice %1 {offsets = [5, 0], sizes = [1, 256], strides = [1, 1]} : vector<9x256xf32> to vector<1x256xf32>
    %72 = vector.broadcast %71 : vector<1x256xf32> to vector<24x256xf32>
    %73 = arith.mulf %70, %72 : vector<24x256xf32>
    %74 = vector.extract_strided_slice %0 {offsets = [0, 5], sizes = [24, 1], strides = [1, 1]} : vector<24x9xf32> to vector<24x1xf32>
    %75 = vector.broadcast %74 : vector<24x1xf32> to vector<24x256xf32>
    %76 = arith.mulf %73, %75 : vector<24x256xf32>
    %77 = arith.addf %69, %76 : vector<24x256xf32>
    %c241_i32 = arith.constant 241 : i32
    %78 = tpu.dynamic_rotate %32 by %c241_i32 dim 1 : vector<24x256xf32>, i32 -> vector<24x256xf32>
    %79 = vector.extract_strided_slice %1 {offsets = [6, 0], sizes = [1, 256], strides = [1, 1]} : vector<9x256xf32> to vector<1x256xf32>
    %80 = vector.broadcast %79 : vector<1x256xf32> to vector<24x256xf32>
    %81 = arith.mulf %78, %80 : vector<24x256xf32>
    %82 = vector.extract_strided_slice %0 {offsets = [0, 6], sizes = [24, 1], strides = [1, 1]} : vector<24x9xf32> to vector<24x1xf32>
    %83 = vector.broadcast %82 : vector<24x1xf32> to vector<24x256xf32>
    %84 = arith.mulf %81, %83 : vector<24x256xf32>
    %85 = arith.addf %77, %84 : vector<24x256xf32>
    %c240_i32 = arith.constant 240 : i32
    %86 = tpu.dynamic_rotate %32 by %c240_i32 dim 1 : vector<24x256xf32>, i32 -> vector<24x256xf32>
    %87 = vector.extract_strided_slice %1 {offsets = [7, 0], sizes = [1, 256], strides = [1, 1]} : vector<9x256xf32> to vector<1x256xf32>
    %88 = vector.broadcast %87 : vector<1x256xf32> to vector<24x256xf32>
    %89 = arith.mulf %86, %88 : vector<24x256xf32>
    %90 = vector.extract_strided_slice %0 {offsets = [0, 7], sizes = [24, 1], strides = [1, 1]} : vector<24x9xf32> to vector<24x1xf32>
    %91 = vector.broadcast %90 : vector<24x1xf32> to vector<24x256xf32>
    %92 = arith.mulf %89, %91 : vector<24x256xf32>
    %93 = arith.addf %85, %92 : vector<24x256xf32>
    %c239_i32 = arith.constant 239 : i32
    %94 = tpu.dynamic_rotate %32 by %c239_i32 dim 1 : vector<24x256xf32>, i32 -> vector<24x256xf32>
    %95 = vector.extract_strided_slice %1 {offsets = [8, 0], sizes = [1, 256], strides = [1, 1]} : vector<9x256xf32> to vector<1x256xf32>
    %96 = vector.broadcast %95 : vector<1x256xf32> to vector<24x256xf32>
    %97 = arith.mulf %94, %96 : vector<24x256xf32>
    %98 = vector.extract_strided_slice %0 {offsets = [0, 8], sizes = [24, 1], strides = [1, 1]} : vector<24x9xf32> to vector<24x1xf32>
    %99 = vector.broadcast %98 : vector<24x1xf32> to vector<24x256xf32>
    %100 = arith.mulf %97, %99 : vector<24x256xf32>
    %101 = arith.addf %93, %100 : vector<24x256xf32>
    %c0_11 = arith.constant 0 : index
    %c0_12 = arith.constant 0 : index
    %102 = vector.load %arg5[%c0_11, %c0_12] : memref<24x1xf32, #tpu.memory_space<vmem>>, vector<24x1xf32>
    %103 = vector.broadcast %102 : vector<24x1xf32> to vector<24x256xf32>
    %104 = arith.addf %101, %103 : vector<24x256xf32>
    %cst_13 = arith.constant 0.000000e+00 : f32
    %105 = vector.broadcast %cst_13 : f32 to vector<24x256xf32>
    %106 = arith.maximumf %104, %105 : vector<24x256xf32>
    %c0_14 = arith.constant 0 : index
    %c0_15 = arith.constant 0 : index
    %107 = vector.load %arg7[%c0_14, %c0_15] : memref<4x24xf32, #tpu.memory_space<vmem>>, vector<4x24xf32>
    %cst_16 = arith.constant dense<0.000000e+00> : vector<4x256xf32>
    %108 = tpu.matmul %107, %106, %cst_16 {dimension_numbers = #tpu.dot_dimension_numbers<[1], [0], [0], [1], [0, 0, 1, 1], [], []>} : vector<4x24xf32>, vector<24x256xf32>, vector<4x256xf32> -> vector<4x256xf32>
    %c0_17 = arith.constant 0 : index
    %c0_18 = arith.constant 0 : index
    %109 = vector.load %arg8[%c0_17, %c0_18] : memref<4x1xf32, #tpu.memory_space<vmem>>, vector<4x1xf32>
    %110 = vector.broadcast %109 : vector<4x1xf32> to vector<4x256xf32>
    %111 = arith.addf %108, %110 : vector<4x256xf32>
    %112 = arith.addf %111, %3 : vector<4x256xf32>
    %c0_19 = arith.constant 0 : index
    %c0_20 = arith.constant 0 : index
    %c0_21 = arith.constant 0 : index
    %113 = vector.load %arg9[%c0_19, %c0_20, %c0_21] : memref<1x4x256xf32, #tpu.memory_space<vmem>>, vector<1x4x256xf32>
    %114 = vector.shape_cast %113 : vector<1x4x256xf32> to vector<4x256xf32>
    %115 = vector.shape_cast %112 : vector<4x256xf32> to vector<1x4x256xf32>
    tpu.vector_store %arg9[%c0_19, %c0_20, %c0_21], %115 {strides = array<i32>} : memref<1x4x256xf32, #tpu.memory_space<vmem>>, vector<1x4x256xf32>,
    return
  }
  func.func @transform_0(%arg0: i32) -> (i32, i32, i32) {
    %c0_i32 = arith.constant 0 : i32
    %c0_i32_0 = arith.constant 0 : i32
    %c0_i32_1 = arith.constant 0 : i32
    return %arg0, %c0_i32, %c0_i32_0 : i32, i32, i32
  }
  func.func @transform_1(%arg0: i32) -> (i32, i32) {
    %c0_i32 = arith.constant 0 : i32
    %c0_i32_0 = arith.constant 0 : i32
    %c0_i32_1 = arith.constant 0 : i32
    return %c0_i32, %c0_i32_0 : i32, i32
  }
  func.func @transform_2(%arg0: i32) -> (i32, i32) {
    %c0_i32 = arith.constant 0 : i32
    %c0_i32_0 = arith.constant 0 : i32
    %c0_i32_1 = arith.constant 0 : i32
    return %c0_i32, %c0_i32_0 : i32, i32
  }
  func.func @transform_3(%arg0: i32) -> (i32, i32) {
    %c0_i32 = arith.constant 0 : i32
    %c0_i32_0 = arith.constant 0 : i32
    %c0_i32_1 = arith.constant 0 : i32
    return %c0_i32, %c0_i32_0 : i32, i32
  }
  func.func @transform_4(%arg0: i32) -> (i32, i32) {
    %c0_i32 = arith.constant 0 : i32
    %c0_i32_0 = arith.constant 0 : i32
    %c0_i32_1 = arith.constant 0 : i32
    return %c0_i32, %c0_i32_0 : i32, i32
  }
  func.func @transform_5(%arg0: i32) -> (i32, i32) {
    %c0_i32 = arith.constant 0 : i32
    %c0_i32_0 = arith.constant 0 : i32
    %c0_i32_1 = arith.constant 0 : i32
    return %c0_i32, %c0_i32_0 : i32, i32
  }
  func.func @transform_6(%arg0: i32) -> (i32, i32) {
    %c0_i32 = arith.constant 0 : i32
    %c0_i32_0 = arith.constant 0 : i32
    %c0_i32_1 = arith.constant 0 : i32
    return %c0_i32, %c0_i32_0 : i32, i32
  }
  func.func @transform_7(%arg0: i32) -> (i32, i32) {
    %c0_i32 = arith.constant 0 : i32
    %c0_i32_0 = arith.constant 0 : i32
    %c0_i32_1 = arith.constant 0 : i32
    return %c0_i32, %c0_i32_0 : i32, i32
  }
  func.func @transform_8(%arg0: i32) -> (i32, i32, i32) {
    %c0_i32 = arith.constant 0 : i32
    %c0_i32_0 = arith.constant 0 : i32
    %c0_i32_1 = arith.constant 0 : i32
    return %arg0, %c0_i32, %c0_i32_0 : i32, i32, i32
  }
}

</mosaic_0001>

<bundles_post_ra>
// kernel: tpu_custom_call.1
= control target key start
LH: loop header
LB: loop body
LE: loop exit
PB: predicated region body
PF: predicated region fallthrough
CT: control target
= control target key end

     0   :  { %13 = vsyncpa [#allocation3], 0  ;;  %s2099_s0 = inlined_call_operand.vmem [shape: f32[2,4,256], index: 0, kind: input, shape index: {}]   ;;  %s2100_s1 = inlined_call_operand.vmem [shape: f32[24,4], index: 1, kind: input, shape index: {}]   ;;  %s2101_s2 = inlined_call_operand.vmem [shape: f32[24,1], index: 2, kind: input, shape index: {}]   ;;  %s2102_s3 = inlined_call_operand.vmem [shape: f32[24,9], index: 3, kind: input, shape index: {}]   ;;  %s2103_s4 = inlined_call_operand.vmem [shape: f32[24,1], index: 4, kind: input, shape index: {}]   ;;  %s2104_s5 = inlined_call_operand.vmem [shape: f32[9,256], index: 5, kind: input, shape index: {}]   ;;  %s2105_s6 = inlined_call_operand.vmem [shape: f32[4,24], index: 6, kind: input, shape index: {}]   ;;  %s2106_s7 = inlined_call_operand.vmem [shape: f32[4,1], index: 7, kind: input, shape index: {}]   ;;  %s2107_s8 = inlined_call_operand.hbm [shape: f32[2,4,256], index: 8, kind: output, shape index: {}]  }
   0x1   :  { %15 = vsyncpa [#allocation3 + $0x1], 0  ;;  %s1423_s27 = smov 0   ;;  %s1425_s28 = smov 0  }
   0x2   :  { %s1427_s29 = smov 0   ;;  %s1429_s30 = smov 0  }
   0x3 LB: > { %s1444_s9 = sadd.s32 4294967295, %s1357_s30   ;;  %s1191_s10 = sadd.s32 4294967294, %s1357_s30   ;;  %s1357_s30 = sphi %s1429_s30, %s2113_s30   ;;  %s1353_s29 = sphi %s1427_s29, %s2112_s29   ;;  %s1349_s28 = sphi %s1425_s28, %s2111_s28   ;;  %s1345_s27 = sphi %s1423_s27, %s2110_s27  }
   0x4   : > { %s1448_s11 = sadd.s32 1, %s1357_s30   ;;  %s201_s12 = sadd.s32 1, %s1353_s29 }
   0x5   : > { %s198_s13 = ssub.s32 %s1357_s30, %s1448_s11  ;;  %p211_p0 = scmp.ne.s32.totalorder %s1353_s29, %s1349_s28 }
   0x6   : > { %p199_p1 = scmp.eq.s32.totalorder %s198_s13, 0  ;;  %p212_p2 = scmp.eq.s32.totalorder %s1444_s9, 1 }
   0x7   : > { %p217_p3 = scmp.ne.s32.totalorder %s1349_s28, %s1345_s27  ;;  %p218_p4 = scmp.eq.s32.totalorder %s1191_s10, 1 }
   0x8   : > { %s1459_s14 = scalar_select %p199_p1, %s1353_s29, %s201_s12  }
   0x9   : > { %p1461_p5 = por %p212_p2, %p211_p0  ;;  %p1465_p6 = por %p218_p4, %p217_p3 }
   0xa   : > { %p1194_p7 = scmp.ge.s32.totalorder %s1357_s30, 1  ;;  %p265_p8 = scmp.lt.s32.totalorder %s1357_s30, 3 }
   0xc   : > { %p266_p9 = pnand %p1194_p7, %p265_p8 }
   0xd   : > { %p299_p10 = scmp.lt.s32.totalorder (!%p266_p9), %s1444_s9, 1  ;;  %s1366_s10 = smov (!%p266_p9), 17  }
   0xe   : > { %269 = sbr.rel (%p266_p9) target bundleno = 683 (0x2ab), region = 52  ;;  %s1367_s12 = smov (!%p266_p9), 16  }
   0xf   : > { %s1368_s13 = smov (!%p266_p9), 15   ;;  %s1369_s17 = smov (!%p266_p9), 1  }
  0x10   : > { %s1370_s18 = smov (!%p266_p9), 127   ;;  %s1371_s19 = smov (!%p266_p9), 113  }
  0x11   : > { %s1373_s20 = smov (!%p266_p9), 112   ;;  %s1375_s21 = smov (!%p266_p9), 111  }
  0x12   : > { %s1377_s24 = smov (!%p266_p9), [#allocation2]  }
  0x13   : > { %v314_v0 = vld [vmem:[%s2100_s1 + $0x10] sm:$0xff]  ;;  %v313_v1 = vld [vmem:[%s2100_s1 + $0x8] sm:$0xff]  ;;  %v1359_v2 = vmov 0   ;;  %v312_v3 = vld [vmem:[%s2100_s1] sm:$0xff]  ;;  %v1360_v4 = vmov 1   ;;  %v1361_v6 = vmov 2   ;;  %v331_v19 = vlaneseq }
  0x14   : > { %1266 = vset.pattern.permute.xlu1 %v1359_v2  ;;  %1265 = vset.pattern.permute.xlu0 %v1359_v2  ;;  %v482_v5 = vld [vmem:[%s2101_s2 + $0x8] sm:$0xff]  ;;  %v1494_v8 = vld [vmem:[%s2102_s3 + $0x10] sm:$0xff]  ;;  %v1501_v9 = vld [vmem:[%s2102_s3] sm:$0xff]  ;;  %v1362_v10 = vmov 3   ;;  %v1363_v13 = vmov 4   ;;  %v1364_v14 = vmov 5  }
  0x15   : > { %327 = vperm.xlu0 %1265, %v314_v0   ;;  %322 = vperm.xlu1 %1266, %v313_v1   ;;  %v1488_v7 = vld [vmem:[%s2102_s3 + $0x8] sm:$0xff]  ;;  %v483_v11 = vld [vmem:[%s2101_s2 + $0x10] sm:$0xff]  ;;  %v481_v12 = vld [vmem:[%s2101_s2] sm:$0xff]  ;;  %v1365_v15 = vmov 6   ;;  %s300_s22 = scalar_select %p299_p10, %s1444_s9, 1  ;;  %v332_v22 = vshrl.u32 %v331_v19, 7 }
  0x16   : > { %vm1033_vm8 = vcmask 195584  }
  0x17   : > { %s1206_s23 = sshll.u32 %s300_s22, 3  ;;  %v1537_v24 = vsub.s32 1, %v332_v22  ;;  %v1539_v25 = vsub.s32 5, %v332_v22  ;;  %v1543_v27 = vsub.s32 0, %v332_v22  ;;  %v337_v28 = vsub.s32 4, %v332_v22 }
  0x18   : > { %s303_s26 = scalar_lea.vmem %s2099_s0, %s1206_s23  ;;  %v1547_v30 = vsub.s32 2, %v332_v22  ;;  %v1549_v31 = vsub.s32 6, %v332_v22  ;;  %v1564_v40 = vsub.s32 3, %v332_v22  ;;  %v1566_v41 = vsub.s32 7, %v332_v22 }
  0x19   : > { %1267 = vset.pattern.permute.xlu1 %v1360_v4  ;;  %317 = vperm.xlu0 %1265, %v312_v3   ;;  %v1545_v29 = vld [vmem:[%s303_s26] sm:$0xff] }
  0x1a   : > { %360 = vperm.xlu1 %1267, %v313_v1   ;;  %v370_v33 = vrot.slane %v1545_v29, %v1537_v24  ;;  %v374_v34 = vrot.slane %v1545_v29, %v1539_v25  ;;  %v334_v35 = vrot.slane %v1545_v29, %v1543_v27  ;;  %v338_v36 = vrot.slane %v1545_v29, %v337_v28 }
  0x1b   : > { %v412_v38 = vrot.slane %v1545_v29, %v1547_v30  ;;  %v416_v39 = vrot.slane %v1545_v29, %v1549_v31  ;;  %v454_v50 = vrot.slane %v1545_v29, %v1564_v40  ;;  %v458_v51 = vrot.slane %v1545_v29, %v1566_v41 }
  0x1c   : > { %v380_v42 = vrot.slane %v370_v33, %v1537_v24  ;;  %v384_v43 = vrot.slane %v374_v34, %v1537_v24  ;;  %v344_v45 = vrot.slane %v334_v35, %v1543_v27  ;;  %v348_v46 = vrot.slane %v338_v36, %v1543_v27 }
  0x1d   : > { %491 = vperm.xlu0 %1265, %v482_v5   ;;  %v422_v48 = vrot.slane %v412_v38, %v1547_v30  ;;  %v426_v49 = vrot.slane %v416_v39, %v1547_v30  ;;  %v464_v60 = vrot.slane %v454_v50, %v1564_v40  ;;  %v468_v61 = vrot.slane %v458_v51, %v1564_v40 }
  0x1e   : > { %1268 = vset.pattern.permute.xlu1 %v1361_v6 }
  0x1f   : > { %406 = vperm.xlu1 %1268, %v314_v0  }
  0x21   : > { %553 = vperm.xlu0 %1265, %v1488_v7  }
  0x23   : > { %1269 = vset.pattern.permute.xlu1 %v1360_v4 }
  0x24   : > { %356 = vperm.xlu1 %1269, %v312_v3  }
  0x25   : > { %1273 = vset.pattern.permute.xlu0 %v1360_v4 }
  0x26   : > { %364 = vperm.xlu0 %1273, %v314_v0  }
  0x28   : > { %1270 = vset.pattern.permute.xlu1 %v1361_v6 }
  0x29   : > { %402 = vperm.xlu1 %1270, %v313_v1  }
  0x2a   : > { %615 = vperm.xlu0 %1273, %v1494_v8  }
  0x2d   : > { %398 = vperm.xlu1 %1270, %v312_v3  }
  0x2e   : > { %611 = vperm.xlu0 %1273, %v1488_v7  }
  0x31   : > { %1271 = vset.pattern.permute.xlu1 %v1362_v10 }
  0x32   : > { %444 = vperm.xlu1 %1271, %v313_v1   ;;  %607 = vperm.xlu0 %1273, %v1501_v9  }
  0x36   : > { %1272 = vset.pattern.permute.xlu1 %v1359_v2  ;;  %1277 = vset.pattern.permute.xlu0 %v1361_v6 }
  0x37   : > { %496 = vperm.xlu1 %1272, %v483_v11   ;;  %664 = vperm.xlu0 %1277, %v1501_v9  }
  0x3b   : > { %486 = vperm.xlu1 %1272, %v481_v12   ;;  %1278 = vset.pattern.permute.xlu0 %v1362_v10 }
  0x3c   : > { %448 = vperm.xlu0 %1278, %v314_v0  }
  0x3f   : > { %558 = vperm.xlu1 %1272, %v1494_v8  }
  0x40   : > { %440 = vperm.xlu0 %1278, %v312_v3  }
  0x43   : > { %1274 = vset.pattern.permute.xlu1 %v1361_v6 }
  0x44   : > { %672 = vperm.xlu1 %1274, %v1494_v8   ;;  %729 = vperm.xlu0 %1278, %v1494_v8  }
  0x48   : > { %1275 = vset.pattern.permute.xlu1 %v1359_v2  ;;  %725 = vperm.xlu0 %1278, %v1488_v7  }
  0x49   : > { %548 = vperm.xlu1 %1275, %v1501_v9  }
  0x4c   : > { %1281 = vset.pattern.permute.xlu0 %v1363_v13 }
  0x4d   : > { %749 = vperm.xlu0 %1281, %v1488_v7   ;;  %1276 = vset.pattern.permute.xlu1 %v1361_v6 }
  0x4e   : > { %668 = vperm.xlu1 %1276, %v1488_v7  }
  0x51   : > { %1284 = vset.pattern.permute.xlu0 %v1364_v14 }
  0x52   : > { %1279 = vset.pattern.permute.xlu1 %v1363_v13 }
  0x53   : > { %753 = vperm.xlu1 %1279, %v1494_v8  }
  0x57   : > { %1280 = vset.pattern.permute.xlu1 %v1362_v10 }
  0x58   : > { %721 = vperm.xlu1 %1280, %v1501_v9  }
  0x5c   : > { %1282 = vset.pattern.permute.xlu1 %v1364_v14 }
  0x5d   : > { %810 = vperm.xlu1 %1282, %v1494_v8  }
  0x61   : > { %1283 = vset.pattern.permute.xlu1 %v1363_v13 }
  0x62   : > { %745 = vperm.xlu1 %1283, %v1501_v9  }
  0x66   : > { %1285 = vset.pattern.permute.xlu1 %v1365_v15 }
  0x90   : > { %v1527_v16 = vpop.permute.xlu0 %327  ;;  %v323_v17 = vpop.permute.xlu1 %322 }
  0x91   : > { %v351_v52 = vmul.f32 %v344_v45, %v323_v17  ;;  %v352_v53 = vmul.f32 %v348_v46, %v323_v17  ;;  %v353_v17 = vmul.f32 %v344_v45, %v1527_v16 }
  0x94   : > { %v1531_v18 = vpop.permute.xlu0 %317 }
  0x95   : > { %v361_v20 = vpop.permute.xlu1 %360 }
  0x96   : > { %v387_v54 = vmul.f32 %v380_v42, %v361_v20  ;;  %v388_v55 = vmul.f32 %v384_v43, %v361_v20  ;;  %v354_v20 = vmul.f32 %v348_v46, %v1527_v16 }
  0x98   : > { %v492_v21 = vpop.permute.xlu0 %491  ;;  %v393_v62 = vadd.f32 %v387_v54, %v351_v52  ;;  %v394_v63 = vadd.f32 %v388_v55, %v352_v53 }
  0x9a   : > { %v407_v23 = vpop.permute.xlu1 %406 }
  0x9b   : > { %v431_v33 = vmul.f32 %v422_v48, %v407_v23  ;;  %v432_v34 = vmul.f32 %v426_v49, %v407_v23 }
  0x9c   : > { %v1541_v26 = vpop.permute.xlu0 %553 }
  0x9f   : > { %v1551_v32 = vpop.permute.xlu1 %356 }
  0xa1   : > { %v365_v37 = vpop.permute.xlu0 %364 }
  0xa2   : > { %v389_v10 = vmul.f32 %v380_v42, %v365_v37  ;;  %v390_v11 = vmul.f32 %v384_v43, %v365_v37  ;;  %v349_v37 = vmul.f32 %v344_v45, %v1531_v18  ;;  %v350_v45 = vmul.f32 %v348_v46, %v1531_v18 }
  0xa4   : > { %v403_v44 = vpop.permute.xlu1 %402  ;;  %v395_v35 = vadd.f32 %v389_v10, %v353_v17  ;;  %v396_v36 = vadd.f32 %v390_v11, %v354_v20 }
  0xa5   : > { %v1572_v47 = vpop.permute.xlu0 %615  ;;  %v429_v58 = vmul.f32 %v422_v48, %v403_v44  ;;  %v430_v59 = vmul.f32 %v426_v49, %v403_v44  ;;  %v385_v44 = vmul.f32 %v380_v42, %v1551_v32 }
  0xa6   : > { %v437_v16 = vadd.f32 %v431_v33, %v395_v35  ;;  %v438_v51 = vadd.f32 %v432_v34, %v396_v36 }
  0xa7   : > { %v435_v3 = vadd.f32 %v429_v58, %v393_v62  ;;  %v436_v4 = vadd.f32 %v430_v59, %v394_v63  ;;  %v391_v58 = vadd.f32 %v385_v44, %v349_v37  ;;  %v1722_v44 = vand.u32 127, %v331_v19 }
  0xa8   : > { %v399_v56 = vpop.permute.xlu1 %398 }
  0xa9   : > { %v1580_v57 = vpop.permute.xlu0 %611  ;;  %v427_v52 = vmul.f32 %v422_v48, %v399_v56  ;;  %v428_v62 = vmul.f32 %v426_v49, %v399_v56  ;;  %vm525_vm0 = vcmp.lt.s32.totalorder %v1722_v44, 17  ;;  %vm585_vm1 = vcmp.lt.s32.totalorder %v1722_v44, 16 }
  0xaa   : > { %vm642_vm2 = vcmp.lt.s32.totalorder %v1722_v44, 15  ;;  %vm699_vm3 = vcmp.lt.s32.totalorder %v1722_v44, 1  ;;  %vm780_vm4 = vcmp.lt.s32.totalorder %v1722_v44, 127  ;;  %vm837_vm5 = vcmp.lt.s32.totalorder %v1722_v44, 113 }
  0xab   : > { %vm894_vm6 = vcmp.lt.s32.totalorder %v1722_v44, 112  ;;  %vm951_vm7 = vcmp.lt.s32.totalorder %v1722_v44, 111 }
  0xad   : > { %v445_v0 = vpop.permute.xlu1 %444  ;;  %v1584_v1 = vpop.permute.xlu0 %607 }
  0xae   : > { %v471_v5 = vmul.f32 %v464_v60, %v445_v0  ;;  %v472_v6 = vmul.f32 %v468_v61, %v445_v0  ;;  %v433_v0 = vadd.f32 %v427_v52, %v391_v58 }
  0xb0   : > { %v477_v12 = vadd.f32 %v471_v5, %v435_v3  ;;  %v478_v13 = vadd.f32 %v472_v6, %v436_v4 }
  0xb2   : > { %v502_v22 = vadd.f32 %v492_v21, %v478_v13  ;;  %v1588_v28 = vpop.permute.xlu0 %664  ;;  %v501_v38 = vadd.f32 %v492_v21, %v477_v12  ;;  %v386_v21 = vmul.f32 %v384_v43, %v1551_v32  ;;  %v497_v55 = vpop.permute.xlu1 %496 }
  0xb4   : > { %v1590_v39 = vmax.f32 %v502_v22, 0.0  ;;  %v1596_v53 = vmax.f32 %v501_v38, 0.0  ;;  %v392_v5 = vadd.f32 %v386_v21, %v350_v45 }
  0xb6   : > { %519 = vrot.lane.b32.xlu0 %v1590_v39, %s1366_s10  ;;  %v487_v11 = vpop.permute.xlu1 %486  ;;  %v434_v12 = vadd.f32 %v428_v62, %v392_v5 }
  0xb7   : > { %v449_v50 = vpop.permute.xlu0 %448 }
  0xb8   : > { %v473_v23 = vmul.f32 %v464_v60, %v449_v50  ;;  %v474_v54 = vmul.f32 %v468_v61, %v449_v50 }
  0xba   : > { %v479_v59 = vadd.f32 %v473_v23, %v437_v16  ;;  %v480_v42 = vadd.f32 %v474_v54, %v438_v51  ;;  %575 = vrot.lane.b32.xlu0 %v1596_v53, %s1367_s12  ;;  %v559_v17 = vpop.permute.xlu1 %558  ;;  %v1731_v16 = vld [vmem:[%s2104_s5] sm:$0xff]  ;;  %v1736_v51 = vld [vmem:[%s2104_s5 + $0x8] sm:$0xff] }
  0xbb   : > { %v441_v63 = vpop.permute.xlu0 %440  ;;  %v1747_v23 = vrot.slane %v1731_v16, %v1543_v27  ;;  %v1751_v54 = vrot.slane %v1736_v51, %v1543_v27 }
  0xbc   : > { %v503_v48 = vadd.f32 %v497_v55, %v479_v59  ;;  %v504_v3 = vadd.f32 %v497_v55, %v480_v42  ;;  %v469_v4 = vmul.f32 %v464_v60, %v441_v63  ;;  %v470_v43 = vmul.f32 %v468_v61, %v441_v63 }
  0xbd   : > { %v1372_v60 = vmov 7   ;;  %v1374_v61 = vmov 8   ;;  %v1758_v55 = vrot.slane %v1731_v16, %v1537_v24 }
  0xbe   : > { %v1602_v6 = vmax.f32 %v503_v48, 0.0  ;;  %v1604_v32 = vmax.f32 %v504_v3, 0.0  ;;  %v475_v10 = vadd.f32 %v469_v4, %v433_v0  ;;  %v476_v18 = vadd.f32 %v470_v43, %v434_v12 }
  0xbf   : > { %v1677_v20 = vpop.permute.xlu1 %672  ;;  %v1711_v36 = vpop.permute.xlu0 %729 }
  0xc0   : > { %v499_v13 = vadd.f32 %v487_v11, %v475_v10  ;;  %515 = vrot.lane.b32.xlu1 %v1602_v6, %s1366_s10  ;;  %640 = vrot.lane.b32.xlu0 %v1604_v32, %s1368_s13  ;;  %v500_v49 = vadd.f32 %v487_v11, %v476_v18  ;;  %v998_v18 = vld [vmem:[%s2103_s4 + $0x10] sm:$0xff] }
  0xc2   : > { %v1610_v46 = vmax.f32 %v499_v13, 0.0  ;;  %v1620_v56 = vmax.f32 %v500_v49, 0.0 }
  0xc3   : > { %v1717_v38 = vpop.permute.xlu0 %725 }
  0xc4   : > { %521 = vrot.lane.b32.xlu1 %v1604_v32, %s1366_s10  ;;  %573 = vrot.lane.b32.xlu0 %v1610_v46, %s1367_s12 }
  0xc8   : > { %577 = vrot.lane.b32.xlu1 %v1602_v6, %s1367_s12  ;;  %632 = vrot.lane.b32.xlu0 %v1596_v53, %s1368_s13 }
  0xcc   : > { %583 = vrot.lane.b32.xlu1 %v1604_v32, %s1367_s12  ;;  %636 = vrot.lane.b32.xlu0 %v1620_v56, %s1368_s13 }
  0xd0   : > { %513 = vrot.lane.b32.xlu1 %v1596_v53, %s1366_s10  ;;  %695 = vrot.lane.b32.xlu0 %v1590_v39, %s1369_s17 }
  0xd4   : > { %581 = vrot.lane.b32.xlu1 %v1590_v39, %s1367_s12  ;;  %693 = vrot.lane.b32.xlu0 %v1620_v56, %s1369_s17 }
  0xd8   : > { %634 = vrot.lane.b32.xlu1 %v1602_v6, %s1368_s13  ;;  %772 = vrot.lane.b32.xlu0 %v1602_v6, %s1370_s18 }
  0xdc   : > { %806 = vperm.xlu0 %1284, %v1488_v7   ;;  %511 = vrot.lane.b32.xlu1 %v1610_v46, %s1366_s10 }
  0xe0   : > { %776 = vrot.lane.b32.xlu0 %v1590_v39, %s1370_s18  ;;  %517 = vrot.lane.b32.xlu1 %v1620_v56, %s1366_s10  ;;  %s296_s10 = sand.u32 1, %s1349_s28  }
  0xe1   : > { %1287 = vset.pattern.permute.xlu0 %v1365_v15  ;;  %s1118_s22 = scalar_lea.sflag [#allocation3], %s296_s10 }
  0xe4   : > { %829 = vrot.lane.b32.xlu0 %v1602_v6, %s1371_s19  ;;  %579 = vrot.lane.b32.xlu1 %v1620_v56, %s1367_s12  ;;  %s1195_s12 = sshll.u32 %s296_s10, 3 }
  0xe8   : > { %863 = vperm.xlu0 %1287, %v1488_v7   ;;  %638 = vrot.lane.b32.xlu1 %v1590_v39, %s1368_s13 }
  0xec   : > { %774 = vrot.lane.b32.xlu0 %v1620_v56, %s1370_s18  ;;  %691 = vrot.lane.b32.xlu1 %v1602_v6, %s1369_s17 }
  0xed   : > { %1290 = vset.pattern.permute.xlu0 %v1372_v60 }
  0xf0   : > { %833 = vrot.lane.b32.xlu0 %v1590_v39, %s1371_s19  ;;  %697 = vrot.lane.b32.xlu1 %v1604_v32, %s1369_s17 }
  0xf4   : > { %886 = vrot.lane.b32.xlu0 %v1602_v6, %s1373_s20  ;;  %630 = vrot.lane.b32.xlu1 %v1610_v46, %s1368_s13  ;;  %s1207_s13 = sshll.u32 %s1444_s9, 7  ;;  %s1301_s9 = sshll.u32 %s1377_s24, 4  ;;  %s1302_s9 = int_to_ptr.vmem [resolvable:$false] %s1301_s9 }
  0xf5   : > { %s1303_s25 = scalar_lea.vmem %s1302_s9, 256 }
  0xf8   : > { %920 = vperm.xlu0 %1290, %v1488_v7   ;;  %689 = vrot.lane.b32.xlu1 %v1596_v53, %s1369_s17 }
  0xfc   : > { %831 = vrot.lane.b32.xlu0 %v1620_v56, %s1371_s19  ;;  %687 = vrot.lane.b32.xlu1 %v1610_v46, %s1369_s17  ;;  %s298_s17 = scalar_lea.vmem [#allocation2], %s1195_s12 }
  0xfd   : > { %1293 = vset.pattern.permute.xlu0 %v1374_v61 }
 0x100   : > { %890 = vrot.lane.b32.xlu0 %v1590_v39, %s1373_s20  ;;  %867 = vperm.xlu1 %1285, %v1494_v8  }
 0x104   : > { %943 = vrot.lane.b32.xlu0 %v1602_v6, %s1375_s21  ;;  %778 = vrot.lane.b32.xlu1 %v1604_v32, %s1370_s18 }
 0x105   : > { %1286 = vset.pattern.permute.xlu1 %v1364_v14  ;;  %v1685_v14 = vpop.permute.xlu1 %548 }
 0x108   : > { %977 = vperm.xlu0 %1293, %v1488_v7   ;;  %770 = vrot.lane.b32.xlu1 %v1596_v53, %s1370_s18  ;;  %v997_v7 = vld [vmem:[%s2103_s4 + $0x8] sm:$0xff] }
 0x109   : > { %v1694_v22 = vpop.permute.xlu1 %668 }
 0x10c   : > { %941 = vrot.lane.b32.xlu0 %v1596_v53, %s1375_s21  ;;  %802 = vperm.xlu1 %1286, %v1501_v9  }
 0x10d   : > { %v1701_v33 = vpop.permute.xlu1 %753 }
 0x110   : > { %973 = vperm.xlu0 %1293, %v1501_v9   ;;  %835 = vrot.lane.b32.xlu1 %v1604_v32, %s1371_s19 }
 0x111   : > { %1288 = vset.pattern.permute.xlu1 %v1372_v60  ;;  %v1704_v34 = vpop.permute.xlu1 %721 }
 0x114   : > { %939 = vrot.lane.b32.xlu0 %v1610_v46, %s1375_s21  ;;  %924 = vperm.xlu1 %1288, %v1494_v8  }
 0x115   : > { %1295 = vset.pattern.permute.xlu0 %v1359_v2  ;;  %v1708_v35 = vpop.permute.xlu1 %810 }
 0x118   : > { %768 = vrot.lane.b32.xlu1 %v1610_v46, %s1370_s18  ;;  %1006 = vperm.xlu0 %1295, %v997_v7   ;;  %s1132_s18 = sshll.u32 %s298_s17, 4  ;;  %s1133_s18 = int_to_ptr.vmem [resolvable:$true] %s1132_s18 }
 0x119   : > { %1289 = vset.pattern.permute.xlu1 %v1365_v15  ;;  %v1715_v15 = vpop.permute.xlu1 %745  ;;  %s1297_s23 = scalar_lea.vmem %s1133_s18, 128  ;;  %p1304_p0 = scmp.lt.s32.totalorder %s1133_s18, %s1302_s9 }
 0x11a   : > { %p1298_p11 = scmp.ne.s32.totalorder %s1133_s18, %s1297_s23  ;;  %p1305_p1 = scmp.lt.s32.totalorder %s1303_s25, %s1297_s23 }
 0x11c   : > { %827 = vrot.lane.b32.xlu1 %v1596_v53, %s1371_s19  ;;  %p1299_p12 = pnand %p1298_p11, %p1461_p5  ;;  %p1306_p2 = por %p1305_p1, %p1304_p0 }
 0x11e   : > { %p1300_p13 = pneg %p1299_p12 }
 0x120   : > { %859 = vperm.xlu1 %1289, %v1501_v9   ;;  %p1307_p3 = pnand %p1306_p2, %p1300_p13 }
 0x124   : > { %892 = vrot.lane.b32.xlu1 %v1604_v32, %s1373_s20 }
 0x125   : > { %1291 = vset.pattern.permute.xlu1 %v1374_v61 }
 0x128   : > { %981 = vperm.xlu1 %1291, %v1494_v8   ;;  %v1726_v8 = vpop.permute.xlu0 %749 }
 0x12c   : > { %825 = vrot.lane.b32.xlu1 %v1610_v46, %s1371_s19  ;;  %v520_v52 = vpop.permute.xlu0 %519 }
 0x12d   : > { %1292 = vset.pattern.permute.xlu1 %v1372_v60 }
 0x130   : > { %884 = vrot.lane.b32.xlu1 %v1596_v53, %s1373_s20  ;;  %v576_v62 = vpop.permute.xlu0 %575 }
 0x132   : > { %v516_v37 = vpop.permute.xlu1 %515 }
 0x134   : > { %916 = vperm.xlu1 %1292, %v1501_v9   ;;  %v641_v11 = vpop.permute.xlu0 %640 }
 0x136   : > { %v522_v50 = vpop.permute.xlu1 %521 }
 0x137   : > { %v528_v19 = vsel %vm525_vm0, %v516_v37, %v522_v50  ;;  %v531_v9 = vsel %vm525_vm0, %v522_v50, %v516_v37  ;;  %v1796_v50 = vrot.slane %v1731_v16, %v1547_v30 }
 0x138   : > { %949 = vrot.lane.b32.xlu1 %v1604_v32, %s1375_s21  ;;  %v544_v58 = vmul.f32 %v1747_v23, %v531_v9  ;;  %v545_v59 = vmul.f32 %v1751_v54, %v528_v19  ;;  %v1800_v19 = vrot.slane %v1736_v51, %v1547_v30  ;;  %v574_v9 = vpop.permute.xlu0 %573 }
 0x139   : > { %1294 = vset.pattern.permute.xlu1 %v1359_v2  ;;  %v1762_v2 = vrot.slane %v1736_v51, %v1537_v24 }
 0x13a   : > { %v578_v21 = vpop.permute.xlu1 %577  ;;  %v565_v24 = vmul.f32 %v559_v17, %v544_v58  ;;  %v566_v48 = vmul.f32 %v559_v17, %v545_v59 }
 0x13c   : > { %882 = vrot.lane.b32.xlu1 %v1610_v46, %s1373_s20 }
 0x13e   : > { %v584_v27 = vpop.permute.xlu1 %583 }
 0x13f   : > { %v588_v42 = vsel %vm585_vm1, %v578_v21, %v584_v27  ;;  %v591_v45 = vsel %vm585_vm1, %v584_v27, %v578_v21 }
 0x140   : > { %v604_v63 = vmul.f32 %v1758_v55, %v591_v45  ;;  %v605_v0 = vmul.f32 %v1762_v2, %v588_v42  ;;  %888 = vrot.lane.b32.xlu1 %v1620_v56, %s1373_s20 }
 0x142   : > { %v622_v3 = vmul.f32 %v1572_v47, %v604_v63  ;;  %v623_v4 = vmul.f32 %v1572_v47, %v605_v0  ;;  %v514_v5 = vpop.permute.xlu1 %513 }
 0x143   : > { %v527_v43 = vsel %vm525_vm0, %v514_v5, %v520_v52  ;;  %v530_v10 = vsel %vm525_vm0, %v520_v52, %v514_v5 }
 0x144   : > { %v628_v12 = vadd.f32 %v622_v3, %v565_v24  ;;  %v629_v13 = vadd.f32 %v623_v4, %v566_v48  ;;  %947 = vrot.lane.b32.xlu1 %v1590_v39, %s1375_s21  ;;  %v542_v49 = vmul.f32 %v1747_v23, %v530_v10  ;;  %v543_v47 = vmul.f32 %v1751_v54, %v527_v43  ;;  %v633_v3 = vpop.permute.xlu0 %632  ;;  %v1027_v43 = vld [vmem:[%s2106_s7] sm:$0xf] }
 0x146   : > { %v582_v60 = vpop.permute.xlu1 %581  ;;  %v563_v52 = vmul.f32 %v1541_v26, %v542_v49  ;;  %v564_v21 = vmul.f32 %v1541_v26, %v543_v47  ;;  %v996_v26 = vld [vmem:[%s2103_s4] sm:$0xff]  ;;  %v1376_v49 = vmov 0.0  }
 0x147   : > { %v587_v61 = vsel %vm585_vm1, %v576_v62, %v582_v60  ;;  %v590_v17 = vsel %vm585_vm1, %v582_v60, %v576_v62  ;;  %1101 = vmatprep.mubr.f32.mxu0 %v1376_v49 }
 0x148   : > { %v602_v7 = vmul.f32 %v1758_v55, %v590_v17  ;;  %v603_v37 = vmul.f32 %v1762_v2, %v587_v61  ;;  %1011 = vperm.xlu1 %1294, %v998_v18  }
 0x14a   : > { %v620_v58 = vmul.f32 %v1580_v57, %v602_v7  ;;  %v621_v59 = vmul.f32 %v1580_v57, %v603_v37  ;;  %v635_v27 = vpop.permute.xlu1 %634 }
 0x14b   : > { %v645_v42 = vsel %vm642_vm2, %v635_v27, %v641_v11  ;;  %v648_v45 = vsel %vm642_vm2, %v641_v11, %v635_v27 }
 0x14c   : > { %v626_v62 = vadd.f32 %v620_v58, %v563_v52  ;;  %v627_v63 = vadd.f32 %v621_v59, %v564_v21  ;;  %v661_v30 = vmul.f32 %v1796_v50, %v648_v45  ;;  %v662_v0 = vmul.f32 %v1800_v19, %v645_v42  ;;  %945 = vrot.lane.b32.xlu1 %v1620_v56, %s1375_s21  ;;  %s1130_s21 = scalar_lea.hbm %s2107_s8, %s1207_s13 }
 0x14e   : > { %v679_v57 = vmul.f32 %v1677_v20, %v661_v30  ;;  %v680_v24 = vmul.f32 %v1677_v20, %v662_v0  ;;  %v512_v48 = vpop.permute.xlu1 %511  ;;  %v637_v20 = vpop.permute.xlu0 %636 }
 0x150   : > { %v685_v4 = vadd.f32 %v679_v57, %v628_v12  ;;  %v686_v5 = vadd.f32 %v680_v24, %v629_v13  ;;  %1001 = vperm.xlu1 %1294, %v996_v26   ;;  %v709_v26 = vrot.slane %v1731_v16, %v1564_v40  ;;  %v713_v57 = vrot.slane %v1736_v51, %v1564_v40 }
 0x151   : > { %v761_v40 = vmul.f32 %v1701_v33, %v1604_v32 }
 0x152   : > { %v518_v10 = vpop.permute.xlu1 %517 }
 0x153   : > { %v526_v11 = vsel %vm525_vm0, %v512_v48, %v518_v10  ;;  %v529_v18 = vsel %vm525_vm0, %v518_v10, %v512_v48 }
 0x154   : > { %1030 = vperm.xlu1 %1294, %v1027_v43   ;;  %v540_v47 = vmul.f32 %v1747_v23, %v529_v18  ;;  %v541_v12 = vmul.f32 %v1751_v54, %v526_v11  ;;  %v760_v18 = vmul.f32 %v1701_v33, %v1602_v6 }
 0x156   : > { %v580_v13 = vpop.permute.xlu1 %579  ;;  %v561_v37 = vmul.f32 %v1685_v14, %v540_v47  ;;  %v562_v52 = vmul.f32 %v1685_v14, %v541_v12 }
 0x157   : > { %v586_v60 = vsel %vm585_vm1, %v574_v9, %v580_v13  ;;  %v589_v61 = vsel %vm585_vm1, %v580_v13, %v574_v9  ;;  %v696_v9 = vpop.permute.xlu0 %695 }
 0x158   : > { %v600_v17 = vmul.f32 %v1758_v55, %v589_v61  ;;  %v601_v7 = vmul.f32 %v1762_v2, %v586_v60 }
 0x15a   : > { %v618_v21 = vmul.f32 %v1584_v1, %v600_v17  ;;  %v619_v23 = vmul.f32 %v1584_v1, %v601_v7  ;;  %v639_v54 = vpop.permute.xlu1 %638 }
 0x15b   : > { %v644_v58 = vsel %vm642_vm2, %v633_v3, %v639_v54  ;;  %v647_v59 = vsel %vm642_vm2, %v639_v54, %v633_v3  ;;  %v694_v24 = vpop.permute.xlu0 %693 }
 0x15c   : > { %v624_v27 = vadd.f32 %v618_v21, %v561_v37  ;;  %v625_v55 = vadd.f32 %v619_v23, %v562_v52  ;;  %v659_v2 = vmul.f32 %v1796_v50, %v647_v59  ;;  %v660_v42 = vmul.f32 %v1800_v19, %v644_v58 }
 0x15e   : > { %v677_v14 = vmul.f32 %v1694_v22, %v659_v2  ;;  %v678_v45 = vmul.f32 %v1694_v22, %v660_v42  ;;  %v692_v30 = vpop.permute.xlu1 %691 }
 0x15f   : > { %v773_v12 = vpop.permute.xlu0 %772 }
 0x160   : > { %v683_v1 = vadd.f32 %v677_v14, %v626_v62  ;;  %v684_v0 = vadd.f32 %v678_v45, %v627_v63 }
 0x162   : > { %v698_v48 = vpop.permute.xlu1 %697 }
 0x163   : > { %v702_v3 = vsel %vm699_vm3, %v692_v30, %v698_v48  ;;  %v705_v43 = vsel %vm699_vm3, %v698_v48, %v692_v30  ;;  %v1873_v52 = vpop.permute.xlu0 %806 }
 0x164   : > { %v718_v22 = vmul.f32 %v709_v26, %v705_v43  ;;  %v719_v10 = vmul.f32 %v713_v57, %v702_v3 }
 0x166   : > { %v736_v11 = vmul.f32 %v1711_v36, %v718_v22  ;;  %v737_v62 = vmul.f32 %v1711_v36, %v719_v10  ;;  %v631_v63 = vpop.permute.xlu1 %630 }
 0x167   : > { %v643_v49 = vsel %vm642_vm2, %v631_v63, %v637_v20  ;;  %v646_v47 = vsel %vm642_vm2, %v637_v20, %v631_v63 }
 0x168   : > { %v742_v13 = vadd.f32 %v736_v11, %v685_v4  ;;  %v743_v60 = vadd.f32 %v737_v62, %v686_v5  ;;  %v657_v61 = vmul.f32 %v1796_v50, %v646_v47  ;;  %v658_v36 = vmul.f32 %v1800_v19, %v643_v49 }
 0x169   : > { %v1919_v62 = vrot.slane %v1736_v51, %v1549_v31 }
 0x16a   : > { %v675_v17 = vmul.f32 %v1588_v28, %v657_v61  ;;  %v676_v6 = vmul.f32 %v1588_v28, %v658_v36  ;;  %v690_v7 = vpop.permute.xlu1 %689  ;;  %v766_v37 = vadd.f32 %v760_v18, %v742_v13  ;;  %v767_v32 = vadd.f32 %v761_v40, %v743_v60 }
 0x16b   : > { %v701_v33 = vsel %vm699_vm3, %v690_v7, %v696_v9  ;;  %v704_v20 = vsel %vm699_vm3, %v696_v9, %v690_v7 }
 0x16c   : > { %v681_v4 = vadd.f32 %v675_v17, %v624_v27  ;;  %v682_v5 = vadd.f32 %v676_v6, %v625_v55  ;;  %v716_v50 = vmul.f32 %v709_v26, %v704_v20  ;;  %v717_v21 = vmul.f32 %v713_v57, %v701_v33  ;;  %v777_v55 = vpop.permute.xlu0 %776 }
 0x16e   : > { %v734_v19 = vmul.f32 %v1717_v38, %v716_v50  ;;  %v735_v23 = vmul.f32 %v1717_v38, %v717_v21  ;;  %v688_v28 = vpop.permute.xlu1 %687 }
 0x16f   : > { %v700_v54 = vsel %vm699_vm3, %v688_v28, %v694_v24  ;;  %v703_v58 = vsel %vm699_vm3, %v694_v24, %v688_v28 }
 0x170   : > { %v1881_v59 = vadd.f32 %v734_v19, %v683_v1  ;;  %v1883_v9 = vadd.f32 %v735_v23, %v684_v0  ;;  %v714_v2 = vmul.f32 %v709_v26, %v703_v58  ;;  %v715_v27 = vmul.f32 %v713_v57, %v700_v54  ;;  %v830_v30 = vpop.permute.xlu0 %829 }
 0x171   : > { %v1896_v1 = vrot.slane %v1731_v16, %v1539_v25  ;;  %v1900_v0 = vrot.slane %v1736_v51, %v1539_v25  ;;  %v1915_v25 = vrot.slane %v1731_v16, %v1549_v31 }
 0x172   : > { %v732_v42 = vmul.f32 %v1704_v34, %v714_v2  ;;  %v733_v14 = vmul.f32 %v1704_v34, %v715_v27 }
 0x174   : > { %v1887_v45 = vadd.f32 %v732_v42, %v681_v4  ;;  %v1889_v38 = vadd.f32 %v733_v14, %v682_v5  ;;  %v1891_v3 = vpop.permute.xlu0 %863  ;;  %v1950_v14 = vrot.slane %v1731_v16, %v1566_v41 }
 0x178   : > { %v1902_v26 = vpop.permute.xlu0 %774 }
 0x17b   : > { %v868_v48 = vpop.permute.xlu1 %867 }
 0x17c   : > { %v834_v63 = vpop.permute.xlu0 %833 }
 0x17f   : > { %v779_v24 = vpop.permute.xlu1 %778 }
 0x180   : > { %v783_v57 = vsel %vm780_vm4, %v773_v12, %v779_v24  ;;  %v786_v43 = vsel %vm780_vm4, %v779_v24, %v773_v12  ;;  %v887_v7 = vpop.permute.xlu0 %886 }
 0x181   : > { %v799_v22 = vmul.f32 %v1896_v1, %v783_v57  ;;  %v800_v10 = vmul.f32 %v1900_v0, %v786_v43 }
 0x183   : > { %v771_v34 = vpop.permute.xlu1 %770  ;;  %v817_v18 = vmul.f32 %v1708_v35, %v799_v22  ;;  %v818_v40 = vmul.f32 %v1708_v35, %v800_v10 }
 0x184   : > { %v1933_v4 = vpop.permute.xlu0 %920  ;;  %v782_v2 = vsel %vm780_vm4, %v771_v34, %v777_v55  ;;  %v785_v27 = vsel %vm780_vm4, %v777_v55, %v771_v34 }
 0x185   : > { %v823_v61 = vadd.f32 %v817_v18, %v766_v37  ;;  %v824_v36 = vadd.f32 %v818_v40, %v767_v32  ;;  %v798_v24 = vmul.f32 %v1900_v0, %v785_v27 }
 0x187   : > { %v1910_v11 = vpop.permute.xlu1 %802  ;;  %v816_v40 = vmul.f32 %v1873_v52, %v798_v24 }
 0x188   : > { %v832_v21 = vpop.permute.xlu0 %831 }
 0x18b   : > { %v836_v49 = vpop.permute.xlu1 %835 }
 0x18c   : > { %v840_v47 = vsel %vm837_vm5, %v830_v30, %v836_v49  ;;  %v843_v12 = vsel %vm837_vm5, %v836_v49, %v830_v30  ;;  %v891_v23 = vpop.permute.xlu0 %890  ;;  %v1954_v30 = vrot.slane %v1736_v51, %v1566_v41  ;;  %v758_v41 = vmul.f32 %v1726_v8, %v1596_v53 }
 0x18d   : > { %v856_v13 = vmul.f32 %v1915_v25, %v840_v47  ;;  %v857_v60 = vmul.f32 %v1919_v62, %v843_v12  ;;  %v759_v51 = vmul.f32 %v1726_v8, %v1590_v39  ;;  %v1984_v39 = vld [vmem:[%s2104_s5 + $0x10] ss:$0 sm:$0xff]  ;;  %v1989_v8 = vld [vmem:[%s2104_s5 + $0x18] ss:$0 sm:$0xff] }
 0x18f   : > { %v874_v31 = vmul.f32 %v868_v48, %v856_v13  ;;  %v875_v17 = vmul.f32 %v868_v48, %v857_v60  ;;  %v925_v6 = vpop.permute.xlu1 %924  ;;  %v797_v48 = vmul.f32 %v1896_v1, %v782_v2 }
 0x190   : > { %v944_v32 = vpop.permute.xlu0 %943 }
 0x191   : > { %v1929_v33 = vadd.f32 %v874_v31, %v823_v61  ;;  %v1931_v35 = vadd.f32 %v875_v17, %v824_v36  ;;  %v815_v18 = vmul.f32 %v1873_v52, %v797_v48  ;;  %v756_v61 = vmul.f32 %v1715_v15, %v1610_v46 }
 0x192   : > { %v757_v36 = vmul.f32 %v1715_v15, %v1620_v56  ;;  %v764_v31 = vadd.f32 %v758_v41, %v1881_v59  ;;  %v765_v17 = vadd.f32 %v759_v51, %v1883_v9 }
 0x193   : > { %v769_v20 = vpop.permute.xlu1 %768 }
 0x194   : > { %v1939_v58 = vpop.permute.xlu0 %977 }
 0x197   : > { %v828_v5 = vpop.permute.xlu1 %827 }
 0x198   : > { %v839_v57 = vsel %vm837_vm5, %v828_v5, %v834_v63  ;;  %v842_v55 = vsel %vm837_vm5, %v834_v63, %v828_v5  ;;  %v942_v22 = vpop.permute.xlu0 %941  ;;  %v784_v5 = vsel %vm780_vm4, %v1902_v26, %v769_v20 }
 0x199   : > { %v854_v10 = vmul.f32 %v1915_v25, %v839_v57  ;;  %v855_v63 = vmul.f32 %v1919_v62, %v842_v55  ;;  %v796_v55 = vmul.f32 %v1900_v0, %v784_v5 }
 0x19b   : > { %v1935_v50 = vpop.permute.xlu1 %859 }
 0x19c   : > { %v2009_v46 = vpop.permute.xlu0 %973 }
 0x19f   : > { %v893_v19 = vpop.permute.xlu1 %892 }
 0x1a0   : > { %v897_v34 = vsel %vm894_vm6, %v887_v7, %v893_v19  ;;  %v900_v16 = vsel %vm894_vm6, %v893_v19, %v887_v7  ;;  %v781_v7 = vsel %vm780_vm4, %v769_v20, %v1902_v26  ;;  %v872_v19 = vmul.f32 %v1891_v3, %v854_v10  ;;  %v940_v0 = vpop.permute.xlu0 %939 }
 0x1a1   : > { %v913_v49 = vmul.f32 %v1950_v14, %v897_v34  ;;  %v914_v47 = vmul.f32 %v1954_v30, %v900_v16  ;;  %v763_v26 = vadd.f32 %v757_v36, %v1889_v38  ;;  %v762_v20 = vadd.f32 %v756_v61, %v1887_v45 }
 0x1a2   : > { %v795_v57 = vmul.f32 %v1896_v1, %v781_v7 }
 0x1a3   : > { %v1937_v28 = vpop.permute.xlu1 %981  ;;  %v931_v2 = vmul.f32 %v925_v6, %v913_v49  ;;  %v932_v27 = vmul.f32 %v925_v6, %v914_v47 }
 0x1a4   : > { %v1007_v36 = vpop.permute.xlu0 %1006 }
 0x1a5   : > { %v938_v1 = vadd.f32 %v932_v27, %v1931_v35 }
 0x1a7   : > { %v826_v37 = vpop.permute.xlu1 %825 }
 0x1a8   : > { %v841_v24 = vsel %vm837_vm5, %v832_v21, %v826_v37 }
 0x1a9   : > { %v853_v51 = vmul.f32 %v1919_v62, %v841_v24  ;;  %v813_v62 = vmul.f32 %v1910_v11, %v795_v57 }
 0x1ab   : > { %v885_v54 = vpop.permute.xlu1 %884  ;;  %v819_v5 = vadd.f32 %v813_v62, %v762_v20 }
 0x1ac   : > { %v896_v12 = vsel %vm894_vm6, %v885_v54, %v891_v23  ;;  %v899_v53 = vsel %vm894_vm6, %v891_v23, %v885_v54  ;;  %v873_v23 = vmul.f32 %v1891_v3, %v855_v63  ;;  %v822_v54 = vadd.f32 %v816_v40, %v765_v17 }
 0x1ad   : > { %v911_v56 = vmul.f32 %v1950_v14, %v896_v12  ;;  %v912_v15 = vmul.f32 %v1954_v30, %v899_v53  ;;  %v838_v3 = vsel %vm837_vm5, %v826_v37, %v832_v21  ;;  %v937_v21 = vadd.f32 %v931_v2, %v1929_v33 }
 0x1ae   : > { %v879_v16 = vadd.f32 %v873_v23, %v822_v54  ;;  %v852_v41 = vmul.f32 %v1915_v25, %v838_v3 }
 0x1af   : > { %v1945_v42 = vpop.permute.xlu1 %916  ;;  %v930_v6 = vmul.f32 %v1933_v4, %v912_v15 }
 0x1b1   : > { %v936_v49 = vadd.f32 %v930_v6, %v879_v16 }
 0x1b3   : > { %v950_v43 = vpop.permute.xlu1 %949 }
 0x1b4   : > { %v954_v52 = vsel %vm951_vm7, %v944_v32, %v950_v43  ;;  %v957_v13 = vsel %vm951_vm7, %v950_v43, %v944_v32  ;;  %v821_v32 = vadd.f32 %v815_v18, %v764_v31  ;;  %v929_v43 = vmul.f32 %v1933_v4, %v911_v56 }
 0x1b5   : > { %v970_v59 = vmul.f32 %v1984_v39, %v954_v52  ;;  %v971_v9 = vmul.f32 %v1989_v8, %v957_v13 }
 0x1b6   : > { %v878_v34 = vadd.f32 %v872_v19, %v821_v32 }
 0x1b7   : > { %v883_v60 = vpop.permute.xlu1 %882  ;;  %v988_v38 = vmul.f32 %v1937_v28, %v970_v59  ;;  %v989_v45 = vmul.f32 %v1937_v28, %v971_v9  ;;  %v814_v28 = vmul.f32 %v1910_v11, %v796_v55  ;;  %v871_v11 = vmul.f32 %v1935_v50, %v853_v51 }
 0x1b8   : > { %v935_v40 = vadd.f32 %v929_v43, %v878_v34 }
 0x1b9   : > { %v994_v18 = vadd.f32 %v988_v38, %v937_v21  ;;  %v995_v47 = vadd.f32 %v989_v45, %v938_v1  ;;  %v820_v19 = vadd.f32 %v814_v28, %v763_v26  ;;  %v1108_v45 = vcombine.high %v1545_v29, %v1545_v29 }
 0x1bb   : > { %v889_v48 = vpop.permute.xlu1 %888  ;;  %v877_v32 = vadd.f32 %v871_v11, %v820_v19 }
 0x1bc   : > { %v895_v37 = vsel %vm894_vm6, %v883_v60, %v889_v48  ;;  %v898_v4 = vsel %vm894_vm6, %v889_v48, %v883_v60  ;;  %v870_v60 = vmul.f32 %v1935_v50, %v852_v41 }
 0x1bd   : > { %v909_v12 = vmul.f32 %v1950_v14, %v895_v37  ;;  %v910_v53 = vmul.f32 %v1954_v30, %v898_v4 }
 0x1be   : > { %v876_v9 = vadd.f32 %v870_v60, %v819_v5 }
 0x1bf   : > { %v948_v10 = vpop.permute.xlu1 %947  ;;  %v927_v30 = vmul.f32 %v1945_v42, %v909_v12  ;;  %v928_v56 = vmul.f32 %v1945_v42, %v910_v53 }
 0x1c0   : > { %v953_v63 = vsel %vm951_vm7, %v942_v22, %v948_v10  ;;  %v956_v25 = vsel %vm951_vm7, %v948_v10, %v942_v22 }
 0x1c1   : > { %v968_v33 = vmul.f32 %v1984_v39, %v953_v63  ;;  %v969_v35 = vmul.f32 %v1989_v8, %v956_v25  ;;  %v934_v3 = vadd.f32 %v928_v56, %v877_v32  ;;  %v933_v24 = vadd.f32 %v927_v30, %v876_v9 }
 0x1c3   : > { %v1012_v52 = vpop.permute.xlu1 %1011  ;;  %v986_v13 = vmul.f32 %v1939_v58, %v968_v33  ;;  %v987_v22 = vmul.f32 %v1939_v58, %v969_v35 }
 0x1c4   : > { %v1018_v61 = vadd.f32 %v1012_v52, %v994_v18  ;;  %v1019_v31 = vadd.f32 %v1012_v52, %v995_v47 }
 0x1c5   : > { %v992_v17 = vadd.f32 %v986_v13, %v935_v40  ;;  %v993_v7 = vadd.f32 %v987_v22, %v936_v49 }
 0x1c6   : > { %v1025_v23 = vmax.f32 %v1019_v31, 0.0  ;;  %v1024_v14 = vmax.f32 %v1018_v61, 0.0 }
 0x1c7   : > { %v1016_v15 = vadd.f32 %v1007_v36, %v992_v17  ;;  %v1017_v59 = vadd.f32 %v1007_v36, %v993_v7  ;;  %v946_v58 = vpop.permute.xlu1 %945 }
 0x1c8   : > { %v952_v50 = vsel %vm951_vm7, %v940_v0, %v946_v58  ;;  %v955_v54 = vsel %vm951_vm7, %v946_v58, %v940_v0  ;;  %1063 = vmatprep.subr.mxu0 %v1025_v23 }
 0x1c9   : > { %v1022_v2 = vmax.f32 %v1016_v15, 0.0  ;;  %v1023_v27 = vmax.f32 %v1017_v59, 0.0  ;;  %v966_v48 = vmul.f32 %v1984_v39, %v952_v50  ;;  %v967_v26 = vmul.f32 %v1989_v8, %v955_v54  ;;  %1064 = vmatpush1.msra.mxu0 %v1024_v14  ;;  %v1026_v8 = vld [vmem:[%s2105_s6] sm:$0xf] }
 0x1cb   : > { %v984_v42 = vmul.f32 %v2009_v46, %v966_v48  ;;  %v985_v20 = vmul.f32 %v2009_v46, %v967_v26  ;;  %1065 = vmatprep.subr.mxu0 %v1023_v27  ;;  %v1002_v55 = vpop.permute.xlu1 %1001 }
 0x1cc   : > { %1066 = vmatpush1.msra.mxu0 %v1022_v2 }
 0x1cd   : > { %v991_v57 = vadd.f32 %v985_v20, %v934_v3  ;;  %v990_v44 = vadd.f32 %v984_v42, %v933_v24 }
 0x1cf   : > { %v1014_v34 = vadd.f32 %v1002_v55, %v990_v44  ;;  %v1015_v16 = vadd.f32 %v1002_v55, %v991_v57  ;;  %v1031_v46 = vpop.permute.xlu1 %1030 }
 0x1d1   : > { %v1020_v43 = vmax.f32 %v1014_v34, 0.0  ;;  %v1021_v39 = vmax.f32 %v1015_v16, 0.0 }
 0x1d3   : > { %1067 = vmatprep.subr.mxu0 %v1021_v39 }
 0x1d4   : > { %1068 = vmatpush1.msra.mxu0 %v1020_v43 }
 0x1d5   : > { %1200 = vmatmul.mubr.msk.f32.vlgmr.msra.gmra.mxu0 %vm1033_vm8, %v1026_v8 }
 0x295   : > { %v1103_v6 = vpop.f32.mrf.mxu0 }
 0x296   : > { %v1104_v38 = vadd.f32 %v1103_v6, %v1031_v46 }
 0x297   : > { %v1105_v41 = vpop.f32.mrf.mxu0 }
 0x298   : > { %v1106_v51 = vadd.f32 %v1105_v41, %v1031_v46  ;;  %v1110_v10 = vadd.f32 %v1104_v38, %v1545_v29 }
 0x29a   : > { %v1111_v21 = vadd.f32 %v1108_v45, %v1106_v51 }
 0x29c   : > { %v1114_v1 = vcombine.low %v1110_v10, %v1111_v21 }
 0x29e   : > { %1116 = vst [vmem:[%s298_s17] sm:$0xff] %v1114_v1 }
 0x29f   : > { %1310 = shalt.err (!%p1307_p3)
}
 0x2a0   : > { %s1311_s26 = scalar_lea.hbm %s1130_s21, 128  ;;  %s1315_s13 = scalar_lea.hbm %s2107_s8, 256 }
 0x2a1   : > { %p1312_p4 = scmp.ne.s32.totalorder %s1130_s21, %s1311_s26  ;;  %p1316_p9 = scmp.lt.s32.totalorder %s1130_s21, %s2107_s8 }
 0x2a2   : > { %p1317_p10 = scmp.lt.s32.totalorder %s1315_s13, %s1311_s26 }
 0x2a3   : > { %p1313_p7 = pnand %p1312_p4, %p1461_p5 }
 0x2a4   : > { %p1318_p11 = por %p1317_p10, %p1316_p9 }
 0x2a5   : > { %p1314_p8 = pneg %p1313_p7 }
 0x2a7   : > { %p1319_p12 = pnand %p1318_p11, %p1314_p8 }
 0x2a9   : > { %1322 = shalt.err (!%p1319_p12)
}
 0x2aa   : > { %1208 = dma.vmem_to_hbm [thread:$0]  (%p1461_p5), %s1133_s18, 128, %s1130_s21, %s1118_s22  }
 0x2ab PF: > { %p1214_p13 = scmp.ge.s32.totalorder %s1357_s30, 2  ;;  %s1144_s20 = sand.u32 1, %s1345_s27  }
 0x2ac   : > { %s1145_s23 = scalar_lea.sflag [#allocation3], %s1144_s20 }
 0x2ad   : > { %p1211_p0 = pnand %p1214_p13, %p1465_p6 }
 0x2af   : > { %p1212_p1 = pneg %p1211_p0 }
 0x2b1   : > { %1340 = dma.done.wait (%p1212_p1), %s1145_s23, 128  }
 0x2b2   : > { %1342 = vsyncadd (%p1212_p1), %s1145_s23, 4294967168  ;;  %p18_p2 = scmp.ge.s32.totalorder %s1448_s11, 4   ;;  %s2110_s27 = smov %s1349_s28 }
 0x2b3   : > { %s2111_s28 = smov %s1353_s29  ;;  %s2112_s29 = smov %s1459_s14 }
 0x2b4   : > { %s2113_s30 = smov %s1448_s11  ;;  %20 = sbr.rel (!%p18_p2) target bundleno = 3 (0x3), region = 87 }
 0x2b9   :  { %1150 = vsyncpa [#allocation3], 1 }
 0x2ba   :  { %1152 = vsyncpa [#allocation3 + $0x1], 1 }

</bundles_post_ra>
